<compile_context>
chip_gen: v6e
topology: v6e:2x2x1
jax: 0.10.0
libtpu: 0.0.40
codegen_flags: <defaults>
</compile_context>

<pallas_src>
import math

import jax
import jax.numpy as jnp
from jax import lax
from jax.experimental import pallas as pl
from jax.experimental.pallas import tpu as pltpu


def _round_up(x, m):
    return ((x + m - 1) // m) * m


def _linear_kernel(x_ref, w_ref, b_ref, o_ref):
    # x_ref: (TM, F) bf16, w_ref: (TE, F) bf16, b_ref: (1, TE) f32, o_ref: (TM, TE)
    acc = lax.dot_general(
        x_ref[...], w_ref[...],
        dimension_numbers=(((1,), (1,)), ((), ())),   # contract F of both -> (TM, TE)
        preferred_element_type=jnp.float32)
    o_ref[...] = (acc + b_ref[...]).astype(o_ref.dtype)


def token_embedding(tokens, weight, bias, *, tm=512, te=512,
                    compute_dtype=jnp.bfloat16):
    """tokens: (..., F); weight: (E, F); bias: (E,). Returns (..., E)."""
    feature_size = tokens.shape[-1]
    emb_size = weight.shape[0]
    lead = tokens.shape[:-1]
    m = int(math.prod(lead)) if lead else 1
    out_dtype = tokens.dtype

    # Lane/sublane-friendly tile sizes (TE multiple of 128, TM multiple of 8),
    # clamped so small shapes don't over-pad.
    TM = min(tm, _round_up(m, 8))
    TE = min(te, _round_up(emb_size, 128))
    m_pad = _round_up(m, TM)
    e_pad = _round_up(emb_size, TE)

    x2d = tokens.reshape(m, feature_size)
    if m_pad != m:
        x2d = jnp.pad(x2d, ((0, m_pad - m), (0, 0)))
    w = weight
    b = bias
    if e_pad != emb_size:
        w = jnp.pad(w, ((0, e_pad - emb_size), (0, 0)))
        b = jnp.pad(b, ((0, e_pad - emb_size),))

    x2d = x2d.astype(compute_dtype)
    w = w.astype(compute_dtype)
    b2d = b.reshape(1, e_pad).astype(jnp.float32)

    grid = (m_pad // TM, e_pad // TE)

    flops = 2 * m_pad * feature_size * e_pad
    bytes_accessed = (x2d.size * x2d.dtype.itemsize
                      + w.size * w.dtype.itemsize
                      + b2d.size * b2d.dtype.itemsize
                      + m_pad * e_pad * jnp.dtype(out_dtype).itemsize)

    out2d = pl.pallas_call(
        _linear_kernel,
        out_shape=jax.ShapeDtypeStruct((m_pad, e_pad), out_dtype),
        grid_spec=pltpu.PrefetchScalarGridSpec(
            num_scalar_prefetch=0,
            grid=grid,
            in_specs=[
                pl.BlockSpec((TM, feature_size), lambda i, j: (i, 0)),   # x tile
                pl.BlockSpec((TE, feature_size), lambda i, j: (j, 0)),   # W tile (E,F) layout
                pl.BlockSpec((1, TE), lambda i, j: (0, j)),              # bias, reused over M
            ],
            out_specs=pl.BlockSpec((TM, TE), lambda i, j: (i, j)),
        ),
        compiler_params=pltpu.CompilerParams(
            dimension_semantics=("parallel", "parallel"),
            vmem_limit_bytes=48 * 1024 * 1024,
        ),
        cost_estimate=pl.CostEstimate(
            flops=flops, transcendentals=0, bytes_accessed=bytes_accessed),
    )(x2d, w, b2d)

    out2d = out2d[:m, :emb_size]
    return out2d.reshape(*lead, emb_size)


if __name__ == "__main__":
    # Small shapes consistent with the module: (batch, seq, feature_size)
    batch, seq, feature_size, emb_size = 2, 8, 32, 64

    key = jax.random.PRNGKey(0)
    k_x, k_w, k_b = jax.random.split(key, 3)

    tokens = jax.random.normal(k_x, (batch, seq, feature_size), dtype=jnp.float32)

    # Deterministic init mimicking nn.Linear defaults: U(-1/sqrt(F), 1/sqrt(F))
    bound = 1.0 / math.sqrt(feature_size)
    weight = jax.random.uniform(k_w, (emb_size, feature_size),
                                minval=-bound, maxval=bound, dtype=jnp.float32)
    bias = jax.random.uniform(k_b, (emb_size,),
                              minval=-bound, maxval=bound, dtype=jnp.float32)

    out = jax.block_until_ready(token_embedding(tokens, weight, bias))
    assert out.shape == (batch, seq, emb_size), out.shape

    # Reference with identical numerics (bf16 inputs, f32 accumulation).
    ref_bf16 = (jnp.dot(tokens.astype(jnp.bfloat16).reshape(-1, feature_size),
                        weight.astype(jnp.bfloat16).T,
                        preferred_element_type=jnp.float32)
                + bias).reshape(batch, seq, emb_size)
    assert jnp.allclose(out, ref_bf16, atol=1e-2, rtol=1e-2), \
        float(jnp.max(jnp.abs(out - ref_bf16)))

    # Sanity vs full-f32 reference (loose tolerance for bf16 rounding).
    ref_f32 = tokens @ weight.T + bias
    assert jnp.allclose(out, ref_f32, atol=5e-2, rtol=5e-2), \
        float(jnp.max(jnp.abs(out - ref_f32)))

    print("KERNEL_OK")
</pallas_src>

<mosaic_0001>
module attributes {stable_mosaic.version = 11 : i64} {
  func.func @_linear_kernel(%arg0: i32, %arg1: i32, %arg2: memref<16x32xbf16, #tpu.memory_space<vmem>>, %arg3: memref<128x32xbf16, #tpu.memory_space<vmem>>, %arg4: memref<1x128xf32, #tpu.memory_space<vmem>>, %arg5: memref<16x128xf32, #tpu.memory_space<vmem>>) attributes {dimension_semantics = [#tpu.dimension_semantics<parallel>, #tpu.dimension_semantics<parallel>], iteration_bounds = array<i64: 1, 1>, scalar_prefetch = 0 : i64, scratch_operands = 0 : i64, tpu.core_type = #tpu.core_type<tc>, window_params = [{transform_indices = @transform_0, window_bounds = array<i64: 16, 32>}, {transform_indices = @transform_1, window_bounds = array<i64: 128, 32>}, {transform_indices = @transform_2, window_bounds = array<i64: 1, 128>}, {transform_indices = @transform_3, window_bounds = array<i64: 16, 128>}]} {
    %c0 = arith.constant 0 : index
    %c0_0 = arith.constant 0 : index
    %0 = vector.load %arg2[%c0, %c0_0] : memref<16x32xbf16, #tpu.memory_space<vmem>>, vector<16x32xbf16>
    %c0_1 = arith.constant 0 : index
    %c0_2 = arith.constant 0 : index
    %1 = vector.load %arg3[%c0_1, %c0_2] : memref<128x32xbf16, #tpu.memory_space<vmem>>, vector<128x32xbf16>
    %cst = arith.constant dense<0.000000e+00> : vector<16x128xf32>
    %2 = tpu.matmul %0, %1, %cst {dimension_numbers = #tpu.dot_dimension_numbers<[1], [1], [0], [0], [0, 0, 1, 0], [], []>} : vector<16x32xbf16>, vector<128x32xbf16>, vector<16x128xf32> -> vector<16x128xf32>
    %c0_3 = arith.constant 0 : index
    %c0_4 = arith.constant 0 : index
    %3 = vector.load %arg4[%c0_3, %c0_4] : memref<1x128xf32, #tpu.memory_space<vmem>>, vector<1x128xf32>
    %4 = vector.broadcast %3 : vector<1x128xf32> to vector<16x128xf32>
    %5 = arith.addf %2, %4 : vector<16x128xf32>
    %c0_5 = arith.constant 0 : index
    %c0_6 = arith.constant 0 : index
    %6 = vector.load %arg5[%c0_5, %c0_6] : memref<16x128xf32, #tpu.memory_space<vmem>>, vector<16x128xf32>
    tpu.vector_store %arg5[%c0_5, %c0_6], %5 {strides = array<i32>} : memref<16x128xf32, #tpu.memory_space<vmem>>, vector<16x128xf32>,
    return
  }
  func.func @transform_0(%arg0: i32, %arg1: i32) -> (i32, i32) {
    %c0_i32 = arith.constant 0 : i32
    %c0_i32_0 = arith.constant 0 : i32
    return %arg0, %c0_i32 : i32, i32
  }
  func.func @transform_1(%arg0: i32, %arg1: i32) -> (i32, i32) {
    %c0_i32 = arith.constant 0 : i32
    %c0_i32_0 = arith.constant 0 : i32
    return %arg1, %c0_i32 : i32, i32
  }
  func.func @transform_2(%arg0: i32, %arg1: i32) -> (i32, i32) {
    %c0_i32 = arith.constant 0 : i32
    %c0_i32_0 = arith.constant 0 : i32
    return %c0_i32, %arg1 : i32, i32
  }
  func.func @transform_3(%arg0: i32, %arg1: i32) -> (i32, i32) {
    %c0_i32 = arith.constant 0 : i32
    return %arg0, %arg1 : i32, i32
  }
}

</mosaic_0001>

<bundles_post_ra>
// kernel: tpu_custom_call.1
= control target key start
LH: loop header
LB: loop body
LE: loop exit
PB: predicated region body
PF: predicated region fallthrough
CT: control target
= control target key end

     0   :  { %v249_v1 = vmov 0.0   ;;  %vm86_vm0 = vcmask 261120   ;;  %vm250_vm1 = vmmov 0   ;;  %s316_s0 = inlined_call_operand.vmem [shape: bf16[16,32], index: 0, kind: input, shape index: {}]   ;;  %s317_s1 = inlined_call_operand.vmem [shape: bf16[128,32], index: 1, kind: input, shape index: {}]   ;;  %s318_s2 = inlined_call_operand.vmem [shape: f32[1,128], index: 2, kind: input, shape index: {}]   ;;  %s319_s3 = inlined_call_operand.hbm [shape: f32[16,128], index: 3, kind: output, shape index: {}]  }
   0x1   :  { %v218_v0 = vld [vmem:[%s317_s1 + $0x38] sm:$0xff]   ;;  %193 = vmatprep.subr.bf16.mxu0 %v249_v1  ;;  %v219_v3 = vld [vmem:[%s317_s1 + $0x30] sm:$0xff]   ;;  %209 = vmatprep.mubr.msk.bf16.mxu0 %vm250_vm1, %v249_v1 }
   0x2   :  { %v112_v2 = vsel %vm86_vm0, %v218_v0, 0  ;;  %v109_v4 = vsel %vm86_vm0, %v219_v3, 0 }
   0x3   :  { %194 = vmatpush3.bf16.xpose.msra.mxu0 %v112_v2 }
   0x4   :  { %195 = vmatprep.subr.bf16.mxu0 %v249_v1 }
   0x5   :  { %8 = vsyncpa [#allocation3], 0  ;;  %v220_v5 = vld [vmem:[%s317_s1 + $0x28] sm:$0xff]   ;;  %v221_v7 = vld [vmem:[%s317_s1 + $0x20] sm:$0xff]   ;;  %s251_s5 = smov [#allocation2]  }
   0x6   :  { %v106_v6 = vsel %vm86_vm0, %v220_v5, 0  ;;  %v103_v8 = vsel %vm86_vm0, %v221_v7, 0  ;;  %v222_v9 = vld [vmem:[%s317_s1 + $0x18] sm:$0xff]   ;;  %v223_v11 = vld [vmem:[%s317_s1 + $0x10] sm:$0xff]   ;;  %v224_v13 = vld [vmem:[%s317_s1 + $0x8] sm:$0xff]   ;;  %s162_s6 = sshll.u32 %s251_s5, 4  ;;  %s163_s6 = int_to_ptr.vmem [resolvable:$true] %s162_s6 }
   0x7   :  { %v100_v10 = vsel %vm86_vm0, %v222_v9, 0  ;;  %v97_v12 = vsel %vm86_vm0, %v223_v11, 0  ;;  %v94_v14 = vsel %vm86_vm0, %v224_v13, 0  ;;  %v225_v15 = vld [vmem:[%s317_s1] sm:$0xff]   ;;  %s227_s1 = scalar_lea.vmem %s163_s6, 256  ;;  %p232_p1 = scmp.lt.s32.totalorder %s163_s6, %s163_s6 }
   0x8   :  { %v91_v16 = vsel %vm86_vm0, %v225_v15, 0  ;;  %v226_v17 = vld [vmem:[%s316_s0] sm:$0xff]   ;;  %p228_p0 = scmp.ne.s32.totalorder %s163_s6, %s227_s1  ;;  %p233_p2 = scmp.lt.s32.totalorder %s227_s1, %s227_s1 }
   0x9   :  { %v173_v18 = vld [vmem:[%s318_s2] ss:$0 sm:$0xff] }
   0xa   :  { %p234_p3 = por %p233_p2, %p232_p1 }
   0xb   :  { %196 = vmatpush3.bf16.xpose.msra.mxu0 %v109_v4 }
   0xc   :  { %197 = vmatprep.subr.bf16.mxu0 %v249_v1  ;;  %p235_p4 = pnand %p234_p3, %p228_p0 }
  0x13   :  { %198 = vmatpush3.bf16.xpose.msra.mxu0 %v106_v6 }
  0x14   :  { %199 = vmatprep.subr.bf16.mxu0 %v249_v1 }
  0x1b   :  { %200 = vmatpush3.bf16.xpose.msra.mxu0 %v103_v8 }
  0x1c   :  { %201 = vmatprep.subr.bf16.mxu0 %v249_v1 }
  0x23   :  { %202 = vmatpush3.bf16.xpose.msra.mxu0 %v100_v10 }
  0x24   :  { %203 = vmatprep.subr.bf16.mxu0 %v249_v1 }
  0x2b   :  { %204 = vmatpush3.bf16.xpose.msra.mxu0 %v97_v12 }
  0x2c   :  { %205 = vmatprep.subr.bf16.mxu0 %v249_v1 }
  0x33   :  { %206 = vmatpush3.bf16.xpose.msra.mxu0 %v94_v14 }
  0x34   :  { %207 = vmatprep.subr.bf16.mxu0 %v249_v1 }
  0x3b   :  { %208 = vmatpush3.bf16.xpose.msra.mxu0 %v91_v16 }
  0x42   :  { %210 = vmatmul.mubr.msk.bf16.vlgmr.msra.gmra.mxu0 %vm86_vm0, %v226_v17 }
 0x102   :  { %v148_v19 = vpop.f32.mrf.mxu0 }
 0x103   :  { %v149_v20 = vadd.f32 %v173_v18, %v148_v19 }
 0x104   :  { %v211_v21 = vpop.f32.mrf.mxu0 }
 0x105   :  { %155 = vst [vmem:[#allocation2] sm:$0xff] %v149_v20 }
 0x106   :  { %v151_v22 = vpop.f32.mrf.mxu0 }
 0x107   :  { %v152_v23 = vadd.f32 %v173_v18, %v151_v22 }
 0x108   :  { %v212_v24 = vpop.f32.mrf.mxu0 }
 0x109   :  { %156 = vst [vmem:[#allocation2 + $0x8] sm:$0xff] %v152_v23 }
 0x10a   :  { %238 = shalt.err (!%p235_p4)
}
 0x10b   :  { %s252_s0 = smov 128   ;;  %s253_s2 = smov 8  }
 0x10c   :  { %168 = dma.vmem_to_hbm [thread:$0]  %s163_s6, 256, %s319_s3, [#allocation3], %s252_s0, %s252_s0, %s253_s2  }
 0x10d   :  { %247 = dma.done.wait [#allocation3], 256  }
 0x10e   :  { %248 = vsyncadd [#allocation3], 4294967040 }
 0x10f   :  { %172 = vsyncpa [#allocation3], 1 }

</bundles_post_ra>
